<compile_context>
chip_gen: v7x
topology: tpu7x:2x2x1
jax: 0.10.0
libtpu: 0.0.40
codegen_flags: <defaults>
</compile_context>

<pallas_src>
import functools

import jax
import jax.numpy as jnp
from jax.experimental import pallas as pl
from jax.experimental.pallas import tpu as pltpu


def _multi_mse_kernel(*refs, w_scaled, rows_total, row_tile, need_mask):
    """One grid step = one row strip of every prediction + the target.

    refs = (d_ref_0, ..., d_ref_{N-1}, t_ref, out_ref)
      d_ref_k : VMEM (TR, L)    prediction k, row strip
      t_ref   : VMEM (TR, L)    target, same row strip
      out_ref : VMEM (1, 1, L)  per-lane partial of the weighted SSE / n_elems
    """
    n = len(w_scaled)
    d_refs = refs[:n]
    t_ref = refs[n]
    out_ref = refs[n + 1]

    t = t_ref[...].astype(jnp.float32)

    if need_mask:
        i = pl.program_id(0)
        row_ids = jax.lax.broadcasted_iota(jnp.int32, t.shape, 0) + i * row_tile
        valid = row_ids < rows_total

    acc = None
    for k, d_ref in enumerate(d_refs):
        diff = d_ref[...].astype(jnp.float32) - t
        sq = diff * diff
        if need_mask:
            sq = jnp.where(valid, sq, jnp.float32(0.0))
        # Sublane (row) reduction only; the cheap lane + tile reduction is
        # deferred to the wrapper.
        part = jnp.float32(w_scaled[k]) * jnp.sum(sq, axis=0, keepdims=True)
        acc = part if acc is None else acc + part

    out_ref[...] = acc[None]          # (1, L) -> (1, 1, L)


def _pick_row_tile(rows, lanes, n_streams, itemsize,
                   budget_bytes=16 * 1024 * 1024, max_tile_rows=1024):
    """Largest row strip (multiple of 8, capped) whose double-buffered blocks
    across all streamed inputs fit comfortably in the scoped VMEM budget."""
    per_row = 2 * n_streams * lanes * itemsize       # double-buffered bytes/row
    fit_rows = max(8, (budget_bytes // max(per_row, 1)) // 8 * 8)
    tile = int(min(fit_rows, max_tile_rows))
    if rows <= tile:
        return rows                                  # single full-extent block
    return tile


def multi_output_mse_loss(d_list, target, weights):
    """Pallas implementation of MultiOutputLoss(nn.MSELoss(), weights)."""
    n = len(d_list)
    assert len(weights) == n
    B, C, H, W = target.shape
    R, L = B * C, H * W
    n_elems = B * C * H * W

    # Row-major contiguous reshape -> bitcast, no HBM copy. No stacking.
    d2 = [x.reshape(R, L) for x in d_list]
    t2 = target.reshape(R, L)

    itemsize = jnp.dtype(target.dtype).itemsize
    tr = _pick_row_tile(R, L, n_streams=n + 1, itemsize=itemsize)
    num_tiles = (R + tr - 1) // tr
    need_mask = (R % tr) != 0
    # TODO(synk): extremely large H*W (a single row strip exceeding the VMEM
    # budget) would additionally need lane tiling; row tiling covers typical
    # NCHW shapes.

    # Fold weights / n_elems into static per-prediction constants.
    w_scaled = tuple(float(w) / float(n_elems) for w in weights)

    kernel = functools.partial(
        _multi_mse_kernel,
        w_scaled=w_scaled,
        rows_total=R,
        row_tile=tr,
        need_mask=need_mask,
    )

    row_spec = pl.BlockSpec((tr, L), lambda i: (i, 0))
    in_specs = [row_spec] * n + [row_spec]            # N predictions + target

    bytes_accessed = (n + 1) * R * L * itemsize + num_tiles * L * 4
    cost = pl.CostEstimate(flops=3 * n * R * L, transcendentals=0,
                           bytes_accessed=bytes_accessed)

    partials = pl.pallas_call(
        kernel,
        out_shape=jax.ShapeDtypeStruct((num_tiles, 1, L), jnp.float32),
        grid=(num_tiles,),
        in_specs=in_specs,
        out_specs=pl.BlockSpec((1, 1, L), lambda i: (i, 0, 0)),
        compiler_params=pltpu.CompilerParams(
            dimension_semantics=("parallel",),   # no cross-step carry
            vmem_limit_bytes=32 * 1024 * 1024,   # raise v5e's 16 MiB default
        ),
        cost_estimate=cost,
    )(*d2, t2)

    # Tiny final reduction (num_tiles * L f32) done in plain JAX.
    return jnp.sum(partials)


if __name__ == "__main__":
    key = jax.random.PRNGKey(0)
    B, C, H, W = 2, 4, 16, 16
    n_outputs = 3
    weights = [0.5, 0.3, 0.2]    # deterministic "module parameters"

    keys = jax.random.split(key, n_outputs + 1)
    d_list = [jax.random.normal(keys[i], (B, C, H, W), dtype=jnp.float32)
              for i in range(n_outputs)]
    target = jax.random.normal(keys[-1], (B, C, H, W), dtype=jnp.float32)

    loss = multi_output_mse_loss(d_list, target, weights)
    loss = jax.block_until_ready(loss)

    # Pure-JAX reference of the PyTorch semantics (MSE mean reduction).
    ref = sum(w * jnp.mean((d - target) ** 2) for w, d in zip(weights, d_list))
    assert jnp.allclose(loss, ref, rtol=1e-5, atol=1e-5), (loss, ref)

    print("KERNEL_OK")
</pallas_src>

<mosaic_0001>
module attributes {stable_mosaic.version = 11 : i64} {
  func.func @_multi_mse_kernel(%arg0: i32, %arg1: memref<8x256xf32, #tpu.memory_space<vmem>>, %arg2: memref<8x256xf32, #tpu.memory_space<vmem>>, %arg3: memref<8x256xf32, #tpu.memory_space<vmem>>, %arg4: memref<8x256xf32, #tpu.memory_space<vmem>>, %arg5: memref<1x1x256xf32, #tpu.memory_space<vmem>>) attributes {dimension_semantics = [#tpu.dimension_semantics<parallel>], iteration_bounds = array<i64: 1>, scalar_prefetch = 0 : i64, scratch_operands = 0 : i64, tpu.core_type = #tpu.core_type<tc>, window_params = [{transform_indices = @transform_0, window_bounds = array<i64: 8, 256>}, {transform_indices = @transform_1, window_bounds = array<i64: 8, 256>}, {transform_indices = @transform_2, window_bounds = array<i64: 8, 256>}, {transform_indices = @transform_3, window_bounds = array<i64: 8, 256>}, {transform_indices = @transform_4, window_bounds = array<i64: 1, 1, 256>}]} {
    %c0 = arith.constant 0 : index
    %c0_0 = arith.constant 0 : index
    %0 = vector.load %arg4[%c0, %c0_0] : memref<8x256xf32, #tpu.memory_space<vmem>>, vector<8x256xf32>
    %c0_1 = arith.constant 0 : index
    %c0_2 = arith.constant 0 : index
    %1 = vector.load %arg1[%c0_1, %c0_2] : memref<8x256xf32, #tpu.memory_space<vmem>>, vector<8x256xf32>
    %2 = arith.subf %1, %0 : vector<8x256xf32>
    %3 = arith.mulf %2, %2 : vector<8x256xf32>
    %cst = arith.constant dense<0.000000e+00> : vector<256xf32>
    %4 = vector.multi_reduction <add>, %3, %cst [0] : vector<8x256xf32> to vector<256xf32>
    %5 = vector.shape_cast %4 : vector<256xf32> to vector<1x256xf32>
    %cst_3 = arith.constant 2.44140625E-4 : f32
    %6 = vector.broadcast %cst_3 : f32 to vector<1x256xf32>
    %7 = arith.mulf %6, %5 : vector<1x256xf32>
    %c0_4 = arith.constant 0 : index
    %c0_5 = arith.constant 0 : index
    %8 = vector.load %arg2[%c0_4, %c0_5] : memref<8x256xf32, #tpu.memory_space<vmem>>, vector<8x256xf32>
    %9 = arith.subf %8, %0 : vector<8x256xf32>
    %10 = arith.mulf %9, %9 : vector<8x256xf32>
    %cst_6 = arith.constant dense<0.000000e+00> : vector<256xf32>
    %11 = vector.multi_reduction <add>, %10, %cst_6 [0] : vector<8x256xf32> to vector<256xf32>
    %12 = vector.shape_cast %11 : vector<256xf32> to vector<1x256xf32>
    %cst_7 = arith.constant 1.46484381E-4 : f32
    %13 = vector.broadcast %cst_7 : f32 to vector<1x256xf32>
    %14 = arith.mulf %13, %12 : vector<1x256xf32>
    %15 = arith.addf %7, %14 : vector<1x256xf32>
    %c0_8 = arith.constant 0 : index
    %c0_9 = arith.constant 0 : index
    %16 = vector.load %arg3[%c0_8, %c0_9] : memref<8x256xf32, #tpu.memory_space<vmem>>, vector<8x256xf32>
    %17 = arith.subf %16, %0 : vector<8x256xf32>
    %18 = arith.mulf %17, %17 : vector<8x256xf32>
    %cst_10 = arith.constant dense<0.000000e+00> : vector<256xf32>
    %19 = vector.multi_reduction <add>, %18, %cst_10 [0] : vector<8x256xf32> to vector<256xf32>
    %20 = vector.shape_cast %19 : vector<256xf32> to vector<1x256xf32>
    %cst_11 = arith.constant 9.76562514E-5 : f32
    %21 = vector.broadcast %cst_11 : f32 to vector<1x256xf32>
    %22 = arith.mulf %21, %20 : vector<1x256xf32>
    %23 = arith.addf %15, %22 : vector<1x256xf32>
    %24 = vector.shape_cast %23 : vector<1x256xf32> to vector<1x1x256xf32>
    %c0_12 = arith.constant 0 : index
    %c0_13 = arith.constant 0 : index
    %c0_14 = arith.constant 0 : index
    %25 = vector.load %arg5[%c0_12, %c0_13, %c0_14] : memref<1x1x256xf32, #tpu.memory_space<vmem>>, vector<1x1x256xf32>
    tpu.vector_store %arg5[%c0_12, %c0_13, %c0_14], %24 {strides = array<i32>} : memref<1x1x256xf32, #tpu.memory_space<vmem>>, vector<1x1x256xf32>,
    return
  }
  func.func @transform_0(%arg0: i32) -> (i32, i32) {
    %c0_i32 = arith.constant 0 : i32
    %c0_i32_0 = arith.constant 0 : i32
    return %arg0, %c0_i32 : i32, i32
  }
  func.func @transform_1(%arg0: i32) -> (i32, i32) {
    %c0_i32 = arith.constant 0 : i32
    %c0_i32_0 = arith.constant 0 : i32
    return %arg0, %c0_i32 : i32, i32
  }
  func.func @transform_2(%arg0: i32) -> (i32, i32) {
    %c0_i32 = arith.constant 0 : i32
    %c0_i32_0 = arith.constant 0 : i32
    return %arg0, %c0_i32 : i32, i32
  }
  func.func @transform_3(%arg0: i32) -> (i32, i32) {
    %c0_i32 = arith.constant 0 : i32
    %c0_i32_0 = arith.constant 0 : i32
    return %arg0, %c0_i32 : i32, i32
  }
  func.func @transform_4(%arg0: i32) -> (i32, i32, i32) {
    %c0_i32 = arith.constant 0 : i32
    %c0_i32_0 = arith.constant 0 : i32
    %c0_i32_1 = arith.constant 0 : i32
    return %arg0, %c0_i32, %c0_i32_0 : i32, i32, i32
  }
}

</mosaic_0001>

<bundles_post_ra>
// kernel: tpu_custom_call.1
= control target key start
LH: loop header
LB: loop body
LE: loop exit
PB: predicated region body
PF: predicated region fallthrough
CT: control target
= control target key end

     0   :  { %9 = vsyncpa [#allocation3], 0  ;;  %s386_s0 = inlined_call_operand.hbm [shape: f32[8,256], index: 0, kind: input, shape index: {}]   ;;  %s387_s1 = inlined_call_operand.hbm [shape: f32[8,256], index: 1, kind: input, shape index: {}]   ;;  %s388_s2 = inlined_call_operand.hbm [shape: f32[8,256], index: 2, kind: input, shape index: {}]   ;;  %s389_s3 = inlined_call_operand.hbm [shape: f32[8,256], index: 3, kind: input, shape index: {}]   ;;  %s390_s4 = inlined_call_operand.hbm [shape: f32[1,1,256], index: 4, kind: output, shape index: {}]  }
   0x1   :  { %10 = vsyncpa [#allocation6], 0 }
   0x2   :  { %11 = vsyncpa [#allocation9], 0 }
   0x3   :  { %12 = vsyncpa [#allocation4], 0  ;;  %s295_s15 = smov [#allocation5]   ;;  %s296_s17 = smov [#allocation2]  }
   0x4   :  { %s29_s16 = sshll.u32 %s295_s15, 4  ;;  %s19_s18 = sshll.u32 %s296_s17, 4  ;;  %s30_s16 = int_to_ptr.vmem [resolvable:$true] %s29_s16  ;;  %s20_s18 = int_to_ptr.vmem [resolvable:$true] %s19_s18 }
   0x5   :  { %s177_s21 = scalar_lea.hbm %s387_s1, 256 }
   0x6   :  { %p178_p0 = scmp.ne.s32.totalorder %s387_s1, %s177_s21  ;;  %p181_p1 = scmp.lt.u32.totalorder %s177_s21, %s387_s1 }
   0x8   :  { %p183_p2 = pnand %p181_p1, %p178_p0 }
   0xa   :  { %186 = shalt.err (!%p183_p2)
}
   0xb   :  { %s187_s26 = scalar_lea.vmem %s30_s16, 256  ;;  %p192_p4 = scmp.lt.s32.totalorder %s30_s16, %s30_s16 }
   0xc   :  { %p188_p3 = scmp.ne.s32.totalorder %s30_s16, %s187_s26  ;;  %p193_p5 = scmp.lt.s32.totalorder %s187_s26, %s187_s26 }
   0xe   :  { %p194_p6 = por %p193_p5, %p192_p4 }
  0x10   :  { %p195_p7 = pnand %p194_p6, %p188_p3 }
  0x12   :  { %198 = shalt.err (!%p195_p7)
}
  0x13   :  { %32 = dma.hbm_to_vmem [thread:$0]  %s387_s1, 256, %s30_s16, [#allocation6]  }
  0x14   :  { %s199_s5 = scalar_lea.hbm %s386_s0, 256 }
  0x15   :  { %p200_p8 = scmp.ne.s32.totalorder %s386_s0, %s199_s5  ;;  %p203_p9 = scmp.lt.u32.totalorder %s199_s5, %s386_s0 }
  0x17   :  { %p205_p10 = pnand %p203_p9, %p200_p8 }
  0x19   :  { %208 = shalt.err (!%p205_p10)
}
  0x1a   :  { %s209_s10 = scalar_lea.vmem %s20_s18, 256  ;;  %p214_p12 = scmp.lt.s32.totalorder %s20_s18, %s20_s18 }
  0x1b   :  { %p210_p11 = scmp.ne.s32.totalorder %s20_s18, %s209_s10  ;;  %p215_p13 = scmp.lt.s32.totalorder %s209_s10, %s209_s10 }
  0x1d   :  { %p216_p0 = por %p215_p13, %p214_p12 }
  0x1f   :  { %p217_p1 = pnand %p216_p0, %p210_p11 }
  0x21   :  { %220 = shalt.err (!%p217_p1)
}
  0x22   :  { %22 = dma.hbm_to_vmem [thread:$0]  %s386_s0, 256, %s20_s18, [#allocation3]  }
  0x23   :  { %s297_s12 = smov [#allocation7]   ;;  %s298_s14 = smov [#allocation8]  }
  0x24   :  { %s39_s13 = sshll.u32 %s297_s12, 4  ;;  %s49_s15 = sshll.u32 %s298_s14, 4  ;;  %s40_s13 = int_to_ptr.vmem [resolvable:$true] %s39_s13  ;;  %s50_s15 = int_to_ptr.vmem [resolvable:$true] %s49_s15 }
  0x25   :  { %s221_s19 = scalar_lea.hbm %s388_s2, 256 }
  0x26   :  { %p222_p2 = scmp.ne.s32.totalorder %s388_s2, %s221_s19  ;;  %p225_p3 = scmp.lt.u32.totalorder %s221_s19, %s388_s2 }
  0x28   :  { %p227_p4 = pnand %p225_p3, %p222_p2 }
  0x2a   :  { %230 = shalt.err (!%p227_p4)
}
  0x2b   :  { %s231_s0 = scalar_lea.vmem %s40_s13, 256  ;;  %p236_p6 = scmp.lt.s32.totalorder %s40_s13, %s40_s13 }
  0x2c   :  { %p232_p5 = scmp.ne.s32.totalorder %s40_s13, %s231_s0  ;;  %p237_p7 = scmp.lt.s32.totalorder %s231_s0, %s231_s0 }
  0x2e   :  { %p238_p8 = por %p237_p7, %p236_p6 }
  0x30   :  { %p239_p9 = pnand %p238_p8, %p232_p5 }
  0x32   :  { %242 = shalt.err (!%p239_p9)
}
  0x33   :  { %42 = dma.hbm_to_vmem [thread:$0]  %s388_s2, 256, %s40_s13, [#allocation6]  }
  0x34   :  { %s243_s27 = scalar_lea.hbm %s389_s3, 256 }
  0x35   :  { %p244_p10 = scmp.ne.s32.totalorder %s389_s3, %s243_s27  ;;  %p247_p11 = scmp.lt.u32.totalorder %s243_s27, %s389_s3 }
  0x37   :  { %p249_p12 = pnand %p247_p11, %p244_p10 }
  0x39   :  { %252 = shalt.err (!%p249_p12)
}
  0x3a   :  { %s253_s6 = scalar_lea.vmem %s50_s15, 256  ;;  %p258_p0 = scmp.lt.s32.totalorder %s50_s15, %s50_s15 }
  0x3b   :  { %p254_p13 = scmp.ne.s32.totalorder %s50_s15, %s253_s6  ;;  %p259_p1 = scmp.lt.s32.totalorder %s253_s6, %s253_s6 }
  0x3d   :  { %p260_p2 = por %p259_p1, %p258_p0 }
  0x3f   :  { %p261_p3 = pnand %p260_p2, %p254_p13 }
  0x41   :  { %264 = shalt.err (!%p261_p3)
}
  0x42   :  { %52 = dma.hbm_to_vmem [thread:$0]  %s389_s3, 256, %s50_s15, [#allocation9]  }
  0x43   :  { %287 = dma.done.wait [#allocation3], 256  }
  0x44   :  { %288 = vsyncadd [#allocation3], 4294967040 }
  0x45   :  { %289 = dma.done.wait [#allocation6], 512  }
  0x46   :  { %290 = vsyncadd [#allocation6], 4294966784 }
  0x47   :  { %291 = dma.done.wait [#allocation9], 256  }
  0x48   :  { %292 = vsyncadd [#allocation9], 4294967040  ;;  %v65_v0 = vld [vmem:[#allocation8] sm:$0xff]  ;;  %v66_v1 = vld [vmem:[#allocation8 + $0x8] sm:$0xff]  ;;  %v137_v45 = vlaneseq  ;;  %v299_v49 = vmov 1966171168  }
  0x49   :  { %v67_v2 = vld [vmem:[#allocation2] sm:$0xff]  ;;  %v68_v3 = vld [vmem:[#allocation2 + $0x8] sm:$0xff]  ;;  %v87_v5 = vld [vmem:[#allocation5] sm:$0xff]  ;;  %v135_v50 = vunpack.c.l.s4 %v299_v49  ;;  %s300_s3 = smov [#allocation10]  }
  0x4a   :  { %v69_v4 = vsub.f32 %v67_v2, %v65_v0  ;;  %v88_v6 = vld [vmem:[#allocation5 + $0x8] sm:$0xff]  ;;  %v70_v7 = vsub.f32 %v68_v3, %v66_v1  ;;  %v89_v8 = vsub.f32 %v87_v5, %v65_v0  ;;  %v109_v10 = vld [vmem:[#allocation7] sm:$0xff]  ;;  %v110_v11 = vld [vmem:[#allocation7 + $0x8] sm:$0xff]  ;;  %v138_v60 = vshrl.u32 %v137_v45, 7  ;;  %s160_s8 = sshll.u32 %s300_s3, 4  ;;  %s161_s8 = int_to_ptr.vmem [resolvable:$true] %s160_s8 }
  0x4b   :  { %v90_v9 = vsub.f32 %v88_v6, %v66_v1  ;;  %v111_v13 = vsub.f32 %v109_v10, %v65_v0  ;;  %v112_v14 = vsub.f32 %v110_v11, %v66_v1  ;;  %v136_v0 = vunpack.c.0.s8 %v135_v50  ;;  %s265_s9 = scalar_lea.vmem %s161_s8, 32  ;;  %p270_p5 = scmp.lt.s32.totalorder %s161_s8, %s161_s8 }
  0x4c   :  { %v71_v12 = vmul.f32 %v69_v4, %v69_v4  ;;  %v72_v15 = vmul.f32 %v70_v7, %v70_v7  ;;  %v91_v16 = vmul.f32 %v89_v8, %v89_v8  ;;  %vm151_vm0 = vcmp.lt.s32.totalorder %v137_v45, 256  ;;  %p266_p4 = scmp.ne.s32.totalorder %s161_s8, %s265_s9  ;;  %p271_p6 = scmp.lt.s32.totalorder %s265_s9, %s265_s9 }
  0x4d   :  { %v92_v17 = vmul.f32 %v90_v9, %v90_v9  ;;  %v113_v19 = vmul.f32 %v111_v13, %v111_v13  ;;  %v114_v20 = vmul.f32 %v112_v14, %v112_v14  ;;  %v139_v7 = vsub.s32 %v136_v0, %v138_v60 }
  0x4e   :  { %v73_v18 = vrot.slane %v71_v12, 4  ;;  %v79_v21 = vrot.slane %v72_v15, 4  ;;  %v93_v22 = vrot.slane %v91_v16, 4  ;;  %p272_p7 = por %p271_p6, %p270_p5 }
  0x4f   :  { %v99_v23 = vrot.slane %v92_v17, 4  ;;  %v115_v25 = vrot.slane %v113_v19, 4  ;;  %v121_v26 = vrot.slane %v114_v20, 4 }
  0x50   :  { %v74_v24 = vadd.f32 %v73_v18, %v71_v12  ;;  %v80_v27 = vadd.f32 %v79_v21, %v72_v15  ;;  %v94_v28 = vadd.f32 %v93_v22, %v91_v16  ;;  %p273_p8 = pnand %p272_p7, %p266_p4 }
  0x51   :  { %v100_v29 = vadd.f32 %v99_v23, %v92_v17  ;;  %v116_v31 = vadd.f32 %v115_v25, %v113_v19  ;;  %v122_v32 = vadd.f32 %v121_v26, %v114_v20 }
  0x52   :  { %v75_v30 = vrot.slane %v74_v24, 2  ;;  %v81_v33 = vrot.slane %v80_v27, 2  ;;  %v95_v34 = vrot.slane %v94_v28, 2 }
  0x53   :  { %v101_v35 = vrot.slane %v100_v29, 2  ;;  %v117_v37 = vrot.slane %v116_v31, 2  ;;  %v123_v38 = vrot.slane %v122_v32, 2 }
  0x54   :  { %v76_v36 = vadd.f32 %v75_v30, %v74_v24  ;;  %v82_v39 = vadd.f32 %v81_v33, %v80_v27  ;;  %v96_v40 = vadd.f32 %v95_v34, %v94_v28 }
  0x55   :  { %v102_v41 = vadd.f32 %v101_v35, %v100_v29  ;;  %v118_v43 = vadd.f32 %v117_v37, %v116_v31  ;;  %v124_v44 = vadd.f32 %v123_v38, %v122_v32 }
  0x56   :  { %v77_v42 = vrot.slane %v76_v36, 1  ;;  %v83_v46 = vrot.slane %v82_v39, 1  ;;  %v97_v47 = vrot.slane %v96_v40, 1 }
  0x57   :  { %v103_v48 = vrot.slane %v102_v41, 1  ;;  %v119_v52 = vrot.slane %v118_v43, 1  ;;  %v125_v53 = vrot.slane %v124_v44, 1 }
  0x58   :  { %v78_v51 = vadd.f32 %v77_v42, %v76_v36  ;;  %v84_v54 = vadd.f32 %v83_v46, %v82_v39  ;;  %v98_v55 = vadd.f32 %v97_v47, %v96_v40 }
  0x59   :  { %v104_v56 = vadd.f32 %v103_v48, %v102_v41  ;;  %v120_v58 = vadd.f32 %v119_v52, %v118_v43  ;;  %v126_v59 = vadd.f32 %v125_v53, %v124_v44 }
  0x5a   :  { %v85_v57 = vmul.f32 0.00024414063, %v78_v51  ;;  %v86_v61 = vmul.f32 0.00024414063, %v84_v54  ;;  %v105_v62 = vmul.f32 0.00014648438, %v98_v55 }
  0x5b   :  { %v106_v63 = vmul.f32 0.00014648438, %v104_v56  ;;  %v127_v1 = vmul.f32 9.765625e-05, %v120_v58  ;;  %v128_v2 = vmul.f32 9.765625e-05, %v126_v59 }
  0x5c   :  { %v107_v3 = vadd.f32 %v105_v62, %v85_v57 }
  0x5d   :  { %v108_v4 = vadd.f32 %v106_v63, %v86_v61 }
  0x5e   :  { %v129_v5 = vadd.f32 %v127_v1, %v107_v3 }
  0x5f   :  { %v130_v6 = vadd.f32 %v128_v2, %v108_v4 }
  0x61   :  { %v133_v8 = vcombine.low %v129_v5, %v130_v6 }
  0x63   :  { %v140_v9 = vrot.slane %v133_v8, %v139_v7 }
  0x65   :  { %v147_v10 = vrot.slane %v140_v9, %v139_v7 }
  0x67   :  { %153 = vst.msk [vmem:[#allocation10] sm:$0x3] %vm151_vm0, %v147_v10 }
  0x68   :  { %276 = shalt.err (!%p273_p8)
}
  0x69   :  { %s277_s11 = scalar_lea.hbm %s390_s4, 32 }
  0x6a   :  { %p278_p9 = scmp.ne.s32.totalorder %s390_s4, %s277_s11  ;;  %p281_p10 = scmp.lt.u32.totalorder %s277_s11, %s390_s4 }
  0x6c   :  { %p283_p11 = pnand %p281_p10, %p278_p9 }
  0x6e   :  { %286 = shalt.err (!%p283_p11)
}
  0x6f   :  { %163 = dma.vmem_to_hbm [thread:$0]  %s161_s8, 32, %s390_s4, [#allocation4]  }
  0x70   :  { %293 = dma.done.wait [#allocation4], 32  }
  0x71   :  { %294 = vsyncadd [#allocation4], 4294967264 }
  0x72   :  { %167 = vsyncpa [#allocation3], 1 }
  0x73   :  { %168 = vsyncpa [#allocation6], 1 }
  0x74   :  { %169 = vsyncpa [#allocation9], 1 }
  0x75   :  { %170 = vsyncpa [#allocation4], 1 }

</bundles_post_ra>
